<compile_context>
chip_gen: v7x
topology: tpu7x:2x2x1
jax: 0.10.0
libtpu: 0.0.40
codegen_flags: <defaults>
</compile_context>

<pallas_src>
import jax
import jax.numpy as jnp
from jax.experimental import pallas as pl
from jax.experimental.pallas import tpu as pltpu

N_HEADS = 2


def msa_kernel(x_ref, wqkv_ref, bqkv_ref, wc0_ref, wc1_ref, bc_ref, o_ref):
    # x_ref: (1, T, D) block for one batch element.
    x = x_ref[0].astype(jnp.float32)                    # (T, D)
    T, D = x.shape
    scale = 1.0 / (float(T - 1) ** 0.5)                 # PyTorch divides by sqrt(number_tokens - 1)

    # Single fused Q/K/V projection for both heads: (T, D) @ (D, 3*H*D) -> (T, 3*H*D).
    qkv = jnp.dot(x, wqkv_ref[...], preferred_element_type=jnp.float32) + bqkv_ref[...]

    def head_out(h):
        base = h * 3 * D
        q = qkv[:, base:base + D]                       # (T, D)
        k = qkv[:, base + D:base + 2 * D]               # (T, D)
        v = qkv[:, base + 2 * D:base + 3 * D]           # (T, D)
        s = jnp.dot(q, k.T, preferred_element_type=jnp.float32) * scale   # (T, T)
        s = s - jnp.max(s, axis=-1, keepdims=True)
        p = jnp.exp(s)
        denom = jnp.sum(p, axis=-1, keepdims=True)      # (T, 1)
        pv = jnp.dot(p, v, preferred_element_type=jnp.float32)            # (T, D)
        # Deferred softmax normalization: scale the (T, D) output, not the (T, T) matrix.
        return pv * pl.reciprocal(denom, approx=False)

    h0 = head_out(0)
    h1 = head_out(1)

    # Conv1d(kernel_size=1) split across the two head blocks of the channel axis:
    # out = Wc[:, :T] @ head0 + Wc[:, T:] @ head1 + bc   (no concatenate / extra VMEM copy)
    out = (jnp.dot(wc0_ref[...], h0, preferred_element_type=jnp.float32)
           + jnp.dot(wc1_ref[...], h1, preferred_element_type=jnp.float32)
           + bc_ref[...])
    o_ref[0] = out.astype(o_ref.dtype)


def msa_module_forward(tokens, params):
    wq, bq, wk, bk, wv, bv, wc, bc = params
    n, T, D = tokens.shape
    c_out = wc.shape[0]

    # Host-side weight fusion (trace-time prep, negligible cost):
    #   W_qkv[:, h*3D : h*3D+D]     = wq[h]
    #   W_qkv[:, h*3D+D : h*3D+2D]  = wk[h]
    #   W_qkv[:, h*3D+2D: h*3D+3D]  = wv[h]
    w_qkv = jnp.concatenate(
        [jnp.concatenate([wq[h], wk[h], wv[h]], axis=1) for h in range(N_HEADS)], axis=1)
    b_qkv = jnp.concatenate(
        [jnp.concatenate([bq[h], bk[h], bv[h]], axis=1) for h in range(N_HEADS)], axis=1)
    wc0 = wc[:, :T]          # head-0 channel block of the 1x1 conv
    wc1 = wc[:, T:2 * T]     # head-1 channel block

    def full_spec(shape):
        return pl.BlockSpec(tuple(shape), lambda b, _s=len(shape): (0,) * _s)

    return pl.pallas_call(
        msa_kernel,
        out_shape=jax.ShapeDtypeStruct((n, c_out, D), jnp.float32),
        grid=(n,),
        in_specs=[
            pl.BlockSpec((1, T, D), lambda b: (b, 0, 0)),   # tokens: one batch row per step
            full_spec(w_qkv.shape), full_spec(b_qkv.shape),
            full_spec(wc0.shape), full_spec(wc1.shape), full_spec(bc.shape),
        ],
        out_specs=pl.BlockSpec((1, c_out, D), lambda b: (b, 0, 0)),
        # Batch elements are independent: "parallel" lets v7x shard them across its 2 TCs.
        compiler_params=pltpu.CompilerParams(dimension_semantics=("parallel",)),
    )(tokens, w_qkv, b_qkv, wc0, wc1, bc)


def msa_ref(tokens, params):
    """Pure-JAX reference replicating the PyTorch forward."""
    wq, bq, wk, bk, wv, bv, wc, bc = params
    n, T, D = tokens.shape
    outs = []
    for b in range(n):
        x = tokens[b]
        heads = []
        for h in range(N_HEADS):
            q = x @ wq[h] + bq[h]
            k = x @ wk[h] + bk[h]
            v = x @ wv[h] + bv[h]
            s = (q @ k.T) / ((T - 1) ** 0.5)
            p = jax.nn.softmax(s, axis=-1)
            heads.append(p @ v)
        concat = jnp.concatenate(heads, axis=0)   # (n_heads*T, D)
        outs.append(wc @ concat + bc)             # conv1d(kernel_size=1)
    return jnp.stack(outs)


if __name__ == "__main__":
    # number_tokens MUST be 50 so that n_heads * number_tokens == conv1d in_channels (100).
    n, T, D = 2, 50, 32
    C_IN, C_OUT = N_HEADS * T, 50

    key = jax.random.PRNGKey(0)
    keys = jax.random.split(key, 9)
    s_lin = 1.0 / (D ** 0.5)
    s_conv = 1.0 / (C_IN ** 0.5)

    # Linear weights stored as (in, out); biases as (n_heads, 1, D) for clean 2D broadcasting.
    wq = jax.random.uniform(keys[0], (N_HEADS, D, D), jnp.float32, -s_lin, s_lin)
    bq = jax.random.uniform(keys[1], (N_HEADS, 1, D), jnp.float32, -s_lin, s_lin)
    wk = jax.random.uniform(keys[2], (N_HEADS, D, D), jnp.float32, -s_lin, s_lin)
    bk = jax.random.uniform(keys[3], (N_HEADS, 1, D), jnp.float32, -s_lin, s_lin)
    wv = jax.random.uniform(keys[4], (N_HEADS, D, D), jnp.float32, -s_lin, s_lin)
    bv = jax.random.uniform(keys[5], (N_HEADS, 1, D), jnp.float32, -s_lin, s_lin)
    wc = jax.random.uniform(keys[6], (C_OUT, C_IN), jnp.float32, -s_conv, s_conv)
    bc = jax.random.uniform(keys[7], (C_OUT, 1), jnp.float32, -s_conv, s_conv)
    params = (wq, bq, wk, bk, wv, bv, wc, bc)

    tokens = jax.random.normal(keys[8], (n, T, D), jnp.float32)

    out = msa_module_forward(tokens, params)
    out = jax.block_until_ready(out)

    ref = msa_ref(tokens, params)
    assert out.shape == (n, C_OUT, D), out.shape
    assert jnp.allclose(out, ref, atol=1e-4, rtol=1e-4), float(jnp.max(jnp.abs(out - ref)))

    print("KERNEL_OK")
</pallas_src>

<mosaic_0001>
module attributes {stable_mosaic.version = 11 : i64} {
  func.func @msa_kernel(%arg0: i32, %arg1: memref<1x50x32xf32, #tpu.memory_space<vmem>>, %arg2: memref<32x192xf32, #tpu.memory_space<vmem>>, %arg3: memref<1x192xf32, #tpu.memory_space<vmem>>, %arg4: memref<50x50xf32, #tpu.memory_space<vmem>>, %arg5: memref<50x50xf32, #tpu.memory_space<vmem>>, %arg6: memref<50x1xf32, #tpu.memory_space<vmem>>, %arg7: memref<1x50x32xf32, #tpu.memory_space<vmem>>) attributes {dimension_semantics = [#tpu.dimension_semantics<parallel>], iteration_bounds = array<i64: 2>, scalar_prefetch = 0 : i64, scratch_operands = 0 : i64, tpu.core_type = #tpu.core_type<tc>, window_params = [{transform_indices = @transform_0, window_bounds = array<i64: 1, 50, 32>}, {pipeline_mode = #tpu.pipeline_mode<synchronous>, transform_indices = @transform_1, window_bounds = array<i64: 32, 192>}, {pipeline_mode = #tpu.pipeline_mode<synchronous>, transform_indices = @transform_2, window_bounds = array<i64: 1, 192>}, {pipeline_mode = #tpu.pipeline_mode<synchronous>, transform_indices = @transform_3, window_bounds = array<i64: 50, 50>}, {pipeline_mode = #tpu.pipeline_mode<synchronous>, transform_indices = @transform_4, window_bounds = array<i64: 50, 50>}, {pipeline_mode = #tpu.pipeline_mode<synchronous>, transform_indices = @transform_5, window_bounds = array<i64: 50, 1>}, {transform_indices = @transform_6, window_bounds = array<i64: 1, 50, 32>}]} {
    %c0 = arith.constant 0 : index
    %c0_0 = arith.constant 0 : index
    %c0_1 = arith.constant 0 : index
    %0 = vector.load %arg1[%c0, %c0_0, %c0_1] : memref<1x50x32xf32, #tpu.memory_space<vmem>>, vector<1x50x32xf32>
    %1 = vector.shape_cast %0 : vector<1x50x32xf32> to vector<50x32xf32>
    %c0_2 = arith.constant 0 : index
    %c0_3 = arith.constant 0 : index
    %2 = vector.load %arg2[%c0_2, %c0_3] : memref<32x192xf32, #tpu.memory_space<vmem>>, vector<32x192xf32>
    %cst = arith.constant dense<0.000000e+00> : vector<50x192xf32>
    %3 = tpu.matmul %1, %2, %cst {dimension_numbers = #tpu.dot_dimension_numbers<[1], [0], [0], [1], [0, 0, 1, 1], [], []>} : vector<50x32xf32>, vector<32x192xf32>, vector<50x192xf32> -> vector<50x192xf32>
    %c0_4 = arith.constant 0 : index
    %c0_5 = arith.constant 0 : index
    %4 = vector.load %arg3[%c0_4, %c0_5] : memref<1x192xf32, #tpu.memory_space<vmem>>, vector<1x192xf32>
    %5 = vector.broadcast %4 : vector<1x192xf32> to vector<50x192xf32>
    %6 = arith.addf %3, %5 : vector<50x192xf32>
    %7 = vector.extract_strided_slice %6 {offsets = [0, 0], sizes = [50, 32], strides = [1, 1]} : vector<50x192xf32> to vector<50x32xf32>
    %8 = vector.extract_strided_slice %6 {offsets = [0, 32], sizes = [50, 32], strides = [1, 1]} : vector<50x192xf32> to vector<50x32xf32>
    %9 = vector.extract_strided_slice %6 {offsets = [0, 64], sizes = [50, 32], strides = [1, 1]} : vector<50x192xf32> to vector<50x32xf32>
    %10 = tpu.transpose %8, [1, 0] : vector<50x32xf32> -> vector<32x50xf32>
    %cst_6 = arith.constant dense<0.000000e+00> : vector<50x50xf32>
    %11 = tpu.matmul %7, %10, %cst_6 {dimension_numbers = #tpu.dot_dimension_numbers<[1], [0], [0], [1], [0, 0, 1, 1], [], []>} : vector<50x32xf32>, vector<32x50xf32>, vector<50x50xf32> -> vector<50x50xf32>
    %cst_7 = arith.constant 0.142857149 : f32
    %12 = vector.broadcast %cst_7 : f32 to vector<50x50xf32>
    %13 = arith.mulf %11, %12 : vector<50x50xf32>
    %cst_8 = arith.constant dense<0xFF800000> : vector<50xf32>
    %14 = vector.multi_reduction <maximumf>, %13, %cst_8 [1] : vector<50x50xf32> to vector<50xf32>
    %15 = vector.shape_cast %14 : vector<50xf32> to vector<50x1xf32>
    %16 = vector.broadcast %15 : vector<50x1xf32> to vector<50x50xf32>
    %17 = arith.subf %13, %16 : vector<50x50xf32>
    %18 = math.exp %17 : vector<50x50xf32>
    %cst_9 = arith.constant dense<0.000000e+00> : vector<50xf32>
    %19 = vector.multi_reduction <add>, %18, %cst_9 [1] : vector<50x50xf32> to vector<50xf32>
    %20 = vector.shape_cast %19 : vector<50xf32> to vector<50x1xf32>
    %cst_10 = arith.constant dense<0.000000e+00> : vector<50x32xf32>
    %21 = tpu.matmul %18, %9, %cst_10 {dimension_numbers = #tpu.dot_dimension_numbers<[1], [0], [0], [1], [0, 0, 1, 1], [], []>} : vector<50x50xf32>, vector<50x32xf32>, vector<50x32xf32> -> vector<50x32xf32>
    %22 = tpu.reciprocal %20 : vector<50x1xf32> -> vector<50x1xf32>
    %23 = vector.broadcast %22 : vector<50x1xf32> to vector<50x32xf32>
    %24 = arith.mulf %21, %23 : vector<50x32xf32>
    %25 = vector.extract_strided_slice %6 {offsets = [0, 96], sizes = [50, 32], strides = [1, 1]} : vector<50x192xf32> to vector<50x32xf32>
    %26 = vector.extract_strided_slice %6 {offsets = [0, 128], sizes = [50, 32], strides = [1, 1]} : vector<50x192xf32> to vector<50x32xf32>
    %27 = vector.extract_strided_slice %6 {offsets = [0, 160], sizes = [50, 32], strides = [1, 1]} : vector<50x192xf32> to vector<50x32xf32>
    %28 = tpu.transpose %26, [1, 0] : vector<50x32xf32> -> vector<32x50xf32>
    %cst_11 = arith.constant dense<0.000000e+00> : vector<50x50xf32>
    %29 = tpu.matmul %25, %28, %cst_11 {dimension_numbers = #tpu.dot_dimension_numbers<[1], [0], [0], [1], [0, 0, 1, 1], [], []>} : vector<50x32xf32>, vector<32x50xf32>, vector<50x50xf32> -> vector<50x50xf32>
    %cst_12 = arith.constant 0.142857149 : f32
    %30 = vector.broadcast %cst_12 : f32 to vector<50x50xf32>
    %31 = arith.mulf %29, %30 : vector<50x50xf32>
    %cst_13 = arith.constant dense<0xFF800000> : vector<50xf32>
    %32 = vector.multi_reduction <maximumf>, %31, %cst_13 [1] : vector<50x50xf32> to vector<50xf32>
    %33 = vector.shape_cast %32 : vector<50xf32> to vector<50x1xf32>
    %34 = vector.broadcast %33 : vector<50x1xf32> to vector<50x50xf32>
    %35 = arith.subf %31, %34 : vector<50x50xf32>
    %36 = math.exp %35 : vector<50x50xf32>
    %cst_14 = arith.constant dense<0.000000e+00> : vector<50xf32>
    %37 = vector.multi_reduction <add>, %36, %cst_14 [1] : vector<50x50xf32> to vector<50xf32>
    %38 = vector.shape_cast %37 : vector<50xf32> to vector<50x1xf32>
    %cst_15 = arith.constant dense<0.000000e+00> : vector<50x32xf32>
    %39 = tpu.matmul %36, %27, %cst_15 {dimension_numbers = #tpu.dot_dimension_numbers<[1], [0], [0], [1], [0, 0, 1, 1], [], []>} : vector<50x50xf32>, vector<50x32xf32>, vector<50x32xf32> -> vector<50x32xf32>
    %40 = tpu.reciprocal %38 : vector<50x1xf32> -> vector<50x1xf32>
    %41 = vector.broadcast %40 : vector<50x1xf32> to vector<50x32xf32>
    %42 = arith.mulf %39, %41 : vector<50x32xf32>
    %c0_16 = arith.constant 0 : index
    %c0_17 = arith.constant 0 : index
    %43 = vector.load %arg4[%c0_16, %c0_17] : memref<50x50xf32, #tpu.memory_space<vmem>>, vector<50x50xf32>
    %cst_18 = arith.constant dense<0.000000e+00> : vector<50x32xf32>
    %44 = tpu.matmul %43, %24, %cst_18 {dimension_numbers = #tpu.dot_dimension_numbers<[1], [0], [0], [1], [0, 0, 1, 1], [], []>} : vector<50x50xf32>, vector<50x32xf32>, vector<50x32xf32> -> vector<50x32xf32>
    %c0_19 = arith.constant 0 : index
    %c0_20 = arith.constant 0 : index
    %45 = vector.load %arg5[%c0_19, %c0_20] : memref<50x50xf32, #tpu.memory_space<vmem>>, vector<50x50xf32>
    %cst_21 = arith.constant dense<0.000000e+00> : vector<50x32xf32>
    %46 = tpu.matmul %45, %42, %cst_21 {dimension_numbers = #tpu.dot_dimension_numbers<[1], [0], [0], [1], [0, 0, 1, 1], [], []>} : vector<50x50xf32>, vector<50x32xf32>, vector<50x32xf32> -> vector<50x32xf32>
    %47 = arith.addf %44, %46 : vector<50x32xf32>
    %c0_22 = arith.constant 0 : index
    %c0_23 = arith.constant 0 : index
    %48 = vector.load %arg6[%c0_22, %c0_23] : memref<50x1xf32, #tpu.memory_space<vmem>>, vector<50x1xf32>
    %49 = vector.broadcast %48 : vector<50x1xf32> to vector<50x32xf32>
    %50 = arith.addf %47, %49 : vector<50x32xf32>
    %c0_24 = arith.constant 0 : index
    %c0_25 = arith.constant 0 : index
    %c0_26 = arith.constant 0 : index
    %51 = vector.load %arg7[%c0_24, %c0_25, %c0_26] : memref<1x50x32xf32, #tpu.memory_space<vmem>>, vector<1x50x32xf32>
    %52 = vector.shape_cast %51 : vector<1x50x32xf32> to vector<50x32xf32>
    %53 = vector.shape_cast %50 : vector<50x32xf32> to vector<1x50x32xf32>
    tpu.vector_store %arg7[%c0_24, %c0_25, %c0_26], %53 {strides = array<i32>} : memref<1x50x32xf32, #tpu.memory_space<vmem>>, vector<1x50x32xf32>,
    return
  }
  func.func @transform_0(%arg0: i32) -> (i32, i32, i32) {
    %c0_i32 = arith.constant 0 : i32
    %c0_i32_0 = arith.constant 0 : i32
    %c0_i32_1 = arith.constant 0 : i32
    return %arg0, %c0_i32, %c0_i32_0 : i32, i32, i32
  }
  func.func @transform_1(%arg0: i32) -> (i32, i32) {
    %c0_i32 = arith.constant 0 : i32
    %c0_i32_0 = arith.constant 0 : i32
    %c0_i32_1 = arith.constant 0 : i32
    return %c0_i32, %c0_i32_0 : i32, i32
  }
  func.func @transform_2(%arg0: i32) -> (i32, i32) {
    %c0_i32 = arith.constant 0 : i32
    %c0_i32_0 = arith.constant 0 : i32
    %c0_i32_1 = arith.constant 0 : i32
    return %c0_i32, %c0_i32_0 : i32, i32
  }
  func.func @transform_3(%arg0: i32) -> (i32, i32) {
    %c0_i32 = arith.constant 0 : i32
    %c0_i32_0 = arith.constant 0 : i32
    %c0_i32_1 = arith.constant 0 : i32
    return %c0_i32, %c0_i32_0 : i32, i32
  }
  func.func @transform_4(%arg0: i32) -> (i32, i32) {
    %c0_i32 = arith.constant 0 : i32
    %c0_i32_0 = arith.constant 0 : i32
    %c0_i32_1 = arith.constant 0 : i32
    return %c0_i32, %c0_i32_0 : i32, i32
  }
  func.func @transform_5(%arg0: i32) -> (i32, i32) {
    %c0_i32 = arith.constant 0 : i32
    %c0_i32_0 = arith.constant 0 : i32
    %c0_i32_1 = arith.constant 0 : i32
    return %c0_i32, %c0_i32_0 : i32, i32
  }
  func.func @transform_6(%arg0: i32) -> (i32, i32, i32) {
    %c0_i32 = arith.constant 0 : i32
    %c0_i32_0 = arith.constant 0 : i32
    %c0_i32_1 = arith.constant 0 : i32
    return %arg0, %c0_i32, %c0_i32_0 : i32, i32, i32
  }
}

</mosaic_0001>

<bundles_post_ra>
// kernel: tpu_custom_call.1
= control target key start
LH: loop header
LB: loop body
LE: loop exit
PB: predicated region body
PF: predicated region fallthrough
CT: control target
= control target key end

     0   :  { %s2152_s21 = smov 0   ;;  %s2707_s0 = inlined_call_operand.vmem [shape: f32[2,50,32], index: 0, kind: input, shape index: {}]   ;;  %s2708_s1 = inlined_call_operand.vmem [shape: f32[32,192], index: 1, kind: input, shape index: {}]   ;;  %s2709_s2 = inlined_call_operand.vmem [shape: f32[1,192], index: 2, kind: input, shape index: {}]   ;;  %s2710_s3 = inlined_call_operand.vmem [shape: f32[50,50], index: 3, kind: input, shape index: {}]   ;;  %s2711_s4 = inlined_call_operand.vmem [shape: f32[50,50], index: 4, kind: input, shape index: {}]   ;;  %s2712_s5 = inlined_call_operand.vmem [shape: f32[50,1], index: 5, kind: input, shape index: {}]   ;;  %s2713_s6 = inlined_call_operand.vmem [shape: f32[2,50,32], index: 6, kind: output, shape index: {}]  }
   0x1 LB: > { %s1537_s22 = sadd.s32 4294967295, %s2108_s21   ;;  %p1541_p0 = scmp.ge.s32.totalorder %s2108_s21, 1  ;;  %s2108_s21 = sphi %s2152_s21, %s16_s21  }
   0x2   : > { %p212_p1 = scmp.lt.s32.totalorder %s2108_s21, 3 }
   0x4   : > { %p213_p2 = pnand %p1541_p0, %p212_p1 }
   0x5   : > { %v260_v0 = vld [vmem:[%s2708_s1 + $0x8] sm:$0xff] (!%p213_p2)  ;;  %v262_v1 = vld [vmem:[%s2708_s1 + $0x18] sm:$0xff] (!%p213_p2)  ;;  %v259_v2 = vld [vmem:[%s2708_s1] sm:$0xff] (!%p213_p2)  ;;  %p242_p3 = scmp.lt.s32.totalorder (!%p213_p2), %s1537_s22, 1  ;;  %v2110_v7 = vmov (!%p213_p2), 0.0   ;;  %vm279_vm0 = vcmask (!%p213_p2), 261120   ;;  %v269_v20 = vlaneseq (!%p213_p2) }
   0x6   : > { %216 = sbr.rel (%p213_p2) target bundleno = 1319 (0x527), region = 44  ;;  %v1907_v3 = vpack.c.bf16 (!%p213_p2), %v262_v1, %v260_v0  ;;  %v261_v4 = vld [vmem:[%s2708_s1 + $0x10] sm:$0xff] (!%p213_p2)  ;;  %v264_v5 = vld [vmem:[%s2708_s1 + $0x28] sm:$0xff] (!%p213_p2)  ;;  %v266_v6 = vld [vmem:[%s2708_s1 + $0x38] sm:$0xff] (!%p213_p2)  ;;  %365 = vmatprep.mubr.f32.mxu0 (!%p213_p2), %v2110_v7  ;;  %v2111_v25 = vmov (!%p213_p2), 0.0|0.0   ;;  %s2112_s23 = smov (!%p213_p2), 96  }
   0x7   : > { %v1909_v8 = vpack.c.bf16 (!%p213_p2), %v261_v4, %v259_v2  ;;  %v1911_v9 = vpack.c.bf16 (!%p213_p2), %v266_v6, %v264_v5  ;;  %v263_v10 = vld [vmem:[%s2708_s1 + $0x20] sm:$0xff] (!%p213_p2)  ;;  %v265_v11 = vld [vmem:[%s2708_s1 + $0x30] sm:$0xff] (!%p213_p2)  ;;  %v270_v21 = vshrl.u32 (!%p213_p2), %v269_v20, 7  ;;  %1915 = vmatprep.subr.bf16.mxu1 (!%p213_p2), %v2111_v25  ;;  %s2113_s24 = smov (!%p213_p2), 32   ;;  %vm2114_vm1 = vmmov (!%p213_p2), 0   ;;  %s2115_s25 = smov (!%p213_p2), 64   ;;  %vm2288_vm2 = vmpackc.low (!%p213_p2), %vm279_vm0, %vm279_vm0 }
   0x8   : > { %1908 = vmatprep.subr.bf16.mxu0 (!%p213_p2), %v1907_v3  ;;  %v1913_v12 = vpack.c.bf16 (!%p213_p2), %v265_v11, %v263_v10  ;;  %v267_v23 = vld [vmem:[%s2709_s2] sm:$0x3] (!%p213_p2)  ;;  %1711 = vmatprep.mubr.msk.f32.mxu1 (!%p213_p2), %vm2114_vm1, %v2110_v7  ;;  %vm564_vm3 = vcmask (!%p213_p2), 408576   ;;  %vm583_vm4 = vcmask (!%p213_p2), 402432   ;;  %vm670_vm5 = vcmask (!%p213_p2), 1041408  }
   0x9   : > { %1910 = vmatpush1.bf16.msra.mxu0 (!%p213_p2), %v1909_v8  ;;  %v271_v22 = vsub.s32 (!%p213_p2), 0, %v270_v21  ;;  %v275_v24 = vsub.s32 (!%p213_p2), 1, %v270_v21  ;;  %vm1480_vm6 = vcmask (!%p213_p2), 254976  }
   0xa   : > { %1912 = vmatprep.subr.bf16.mxu0 (!%p213_p2), %v1911_v9 }
   0xb   : > { %v272_v27 = vrot.slane (!%p213_p2), %v267_v23, %v271_v22  ;;  %v2211_v29 = vrot.slane (!%p213_p2), %v267_v23, %v275_v24 }
   0xd   : > { %s2717_s22 = smov (!%p242_p3, %s1537_s22), 1  ;;  %1914 = vmatpush1.bf16.msra.mxu0 %v1913_v12 }
   0xe   : > { %s1983_s15 = smul.u32 56, %s2717_s22  ;;  %1927 = vmatprep.subr.bf16.mxu0 %v2111_v25 }
  0x10   : > { %s246_s18 = scalar_lea.vmem %s2707_s0, %s1983_s15  ;;  %s2689_s28 = scalar_lea.vmem %s2713_s6, %s1983_s15 }
  0x11   : > { %v252_v13 = vld [vmem:[%s246_s18] sm:$0xff]  ;;  %v253_v14 = vld [vmem:[%s246_s18 + $0x8] sm:$0xff]  ;;  %v254_v15 = vld [vmem:[%s246_s18 + $0x10] sm:$0xff] }
  0x12   : > { %1544 = vmatmul.mubr.msk.f32.vlgmr.msra.gmra.mrb[0].mxu0 %vm279_vm0, %v252_v13  ;;  %v255_v16 = vld [vmem:[%s246_s18 + $0x18] sm:$0xff]  ;;  %v256_v17 = vld [vmem:[%s246_s18 + $0x20] sm:$0xff]  ;;  %v257_v18 = vld [vmem:[%s246_s18 + $0x28] sm:$0xff] }
  0x13   : > { %371 = vmatprep.mubr.f32.mxu0 %v2110_v7  ;;  %v258_v19 = vld [vmem:[%s246_s18 + $0x30] sm:$0x3] }
  0x16   : > { %1545 = vmatmul.mubr.msk.f32.gmra.mrb[2].mxu0 %vm279_vm0, %v253_v14 }
  0x17   : > { %377 = vmatprep.mubr.f32.mxu0 %v2110_v7 }
  0x1a   : > { %1546 = vmatmul.mubr.msk.f32.gmra.mrb[4].mxu0 %vm279_vm0, %v254_v15 }
  0x1b   : > { %383 = vmatprep.mubr.f32.mxu0 %v2110_v7 }
  0x1e   : > { %1547 = vmatmul.mubr.msk.f32.gmra.mrb[6].mxu0 %vm279_vm0, %v255_v16 }
  0x1f   : > { %389 = vmatprep.mubr.f32.mxu0 %v2110_v7 }
  0x22   : > { %1548 = vmatmul.mubr.msk.f32.gmra.mrb[8].mxu0 %vm279_vm0, %v256_v17 }
  0x23   : > { %395 = vmatprep.mubr.f32.mxu0 %v2110_v7 }
  0x26   : > { %1549 = vmatmul.mubr.msk.f32.gmra.mrb[10].mxu0 %vm279_vm0, %v257_v18 }
  0x27   : > { %401 = vmatprep.mubr.f32.mxu0 %v2110_v7 }
  0x2a   : > { %1550 = vmatmul.mubr.msk.f32.gmra.mrb[12].mxu0 %vm279_vm0, %v258_v19 }
  0x2b   : > { %1746 = vmatprep.mubr.msk.f32.mxu0 %vm2114_vm1, %v2110_v7 }
  0xe5   : > { %v367_v26 = vpop.f32.mrb[0].mxu0 }
  0xe6   : > { %v369_v28 = vpop.f32.mrb[1].mxu0  ;;  %v2213_v31 = vadd.f32 %v367_v26, %v272_v27 }
  0xe7   : > { %v2218_v34 = vadd.f32 %v369_v28, %v2211_v29 }
  0xe9   : > { %v373_v30 = vpop.f32.mrb[2].mxu0 }
  0xea   : > { %v2215_v32 = vadd.f32 %v373_v30, %v272_v27  ;;  %v375_v33 = vpop.f32.mrb[3].mxu0 }
  0xeb   : > { %v2221_v35 = vadd.f32 %v375_v33, %v2211_v29 }
  0xec   : > { %v1999_v36 = vpack.i.bf16 %v2215_v32, %v2213_v31 }
  0xed   : > { %v2029_v37 = vpack.i.bf16 %v2221_v35, %v2218_v34  ;;  %v1937_v38 = vpack.c.bf16 %v2221_v35, %v2218_v34  ;;  %v379_v39 = vpop.f32.mrb[4].mxu0 }
  0xee   : > { %v381_v40 = vpop.f32.mrb[5].mxu0  ;;  %2000 = vrot.lane.b32.xlu0 %v1999_v36, %s2112_s23  ;;  %v2230_v42 = vadd.f32 %v379_v39, %v272_v27 }
  0xef   : > { %v2235_v45 = vadd.f32 %v381_v40, %v2211_v29 }
  0xf1   : > { %v385_v41 = vpop.f32.mrb[6].mxu0 }
  0xf2   : > { %v2232_v43 = vadd.f32 %v385_v41, %v272_v27  ;;  %v387_v44 = vpop.f32.mrb[7].mxu0 }
  0xf3   : > { %v2238_v46 = vadd.f32 %v387_v44, %v2211_v29 }
  0xf4   : > { %v2004_v47 = vpack.i.bf16 %v2232_v43, %v2230_v42 }
  0xf5   : > { %v2034_v48 = vpack.i.bf16 %v2238_v46, %v2235_v45  ;;  %v1941_v49 = vpack.c.bf16 %v2238_v46, %v2235_v45  ;;  %v391_v50 = vpop.f32.mrb[8].mxu0 }
  0xf6   : > { %v393_v51 = vpop.f32.mrb[9].mxu0  ;;  %2005 = vrot.lane.b32.xlu0 %v2004_v47, %s2112_s23  ;;  %v2247_v53 = vadd.f32 %v391_v50, %v272_v27 }
  0xf7   : > { %v2253_v56 = vadd.f32 %v393_v51, %v2211_v29 }
  0xf9   : > { %v397_v52 = vpop.f32.mrb[10].mxu0 }
  0xfa   : > { %v2249_v54 = vadd.f32 %v397_v52, %v272_v27  ;;  %v399_v55 = vpop.f32.mrb[11].mxu0  ;;  %787 = vrot.lane.b32.xlu0 %v2213_v31, %s2113_s24 }
  0xfb   : > { %v2256_v57 = vadd.f32 %v399_v55, %v2211_v29 }
  0xfc   : > { %v2260_v58 = vpack.i.bf16 %v2249_v54, %v2247_v53 }
  0xfd   : > { %v2039_v59 = vpack.i.bf16 %v2256_v57, %v2253_v56  ;;  %v1945_v60 = vpack.c.bf16 %v2256_v57, %v2253_v56  ;;  %v403_v61 = vpop.f32.mrb[12].mxu0 }
  0xfe   : > { %2010 = vrot.lane.b32.xlu1 %v2260_v58, %s2112_s23  ;;  %791 = vrot.lane.b32.xlu0 %v2230_v42, %s2113_s24  ;;  %v2269_v62 = vadd.f32 %v403_v61, %v272_v27  ;;  %v2271_v63 = vpop.f32.mrb[13].mxu0 }
 0x102   : > { %427 = vrot.lane.b32.xlu1 %v2269_v62, %s2112_s23  ;;  %795 = vrot.lane.b32.xlu0 %v2247_v53, %s2113_s24 }
 0x106   : > { %789 = vrot.lane.b32.xlu1 %v2215_v32, %s2113_s24  ;;  %799 = vrot.lane.b32.xlu0 %v2269_v62, %s2113_s24 }
 0x10a   : > { %793 = vrot.lane.b32.xlu1 %v2232_v43, %s2113_s24  ;;  %2015 = vrot.lane.b32.xlu0 %v1999_v36, %s2115_s25 }
 0x10e   : > { %797 = vrot.lane.b32.xlu1 %v2249_v54, %s2113_s24 }
 0x112   : > { %2020 = vrot.lane.b32.xlu1 %v2004_v47, %s2115_s25 }
 0x160   : > { %v2001_v0 = vpop.permute.xlu0 %2000 }
 0x161   : > { %v2003_v1 = vunpack.i.h.bf16 %v2001_v0  ;;  %v2002_v2 = vunpack.i.l.bf16 %v2001_v0 }
 0x163   : > { %v1916_v4 = vpack.c.bf16 %v2003_v1, %v2002_v2 }
 0x165   : > { %1918 = vmatpush3.bf16.xpose.msk.msra.mxu1 %vm2288_vm2, %v1916_v4 }
 0x166   : > { %1919 = vmatprep.subr.bf16.mxu1 %v2111_v25 }
 0x168   : > { %v2006_v5 = vpop.permute.xlu0 %2005 }
 0x169   : > { %v2008_v6 = vunpack.i.h.bf16 %v2006_v5  ;;  %v2007_v8 = vunpack.i.l.bf16 %v2006_v5 }
 0x16b   : > { %v1920_v9 = vpack.c.bf16 %v2008_v6, %v2007_v8 }
 0x16c   : > { %v788_v10 = vpop.permute.xlu0 %787 }
 0x16d   : > { %1922 = vmatpush3.bf16.xpose.msk.msra.mxu1 %vm2288_vm2, %v1920_v9 }
 0x16e   : > { %1923 = vmatprep.subr.bf16.mxu1 %v2111_v25 }
 0x170   : > { %v2011_v11 = vpop.permute.xlu1 %2010  ;;  %v792_v12 = vpop.permute.xlu0 %791 }
 0x171   : > { %v2013_v13 = vunpack.i.h.bf16 %v2011_v11  ;;  %v2012_v14 = vunpack.i.l.bf16 %v2011_v11 }
 0x173   : > { %v1924_v15 = vpack.c.bf16 %v2013_v13, %v2012_v14 }
 0x174   : > { %v428_v16 = vpop.permute.xlu1 %427  ;;  %v796_v17 = vpop.permute.xlu0 %795 }
 0x175   : > { %1926 = vmatpush3.bf16.xpose.msk.msra.mxu1 %vm2288_vm2, %v1924_v15 }
 0x176   : > { %1709 = vmatprep.subr.mxu1 %v2110_v7 }
 0x178   : > { %v790_v18 = vpop.permute.xlu1 %789  ;;  %v800_v19 = vpop.permute.xlu0 %799 }
 0x17c   : > { %v794_v20 = vpop.permute.xlu1 %793  ;;  %v2016_v21 = vpop.permute.xlu0 %2015 }
 0x17d   : > { %v2018_v22 = vunpack.i.h.bf16 %v2016_v21  ;;  %v2017_v23 = vunpack.i.l.bf16 %v2016_v21  ;;  %1710 = vmatpush3.xpose.msk.msra.mxu1 %vm279_vm0, %v428_v16 }
 0x17e   : > { %1936 = vmatprep.subr.bf16.mxu1 %v2111_v25 }
 0x17f   : > { %v1928_v24 = vpack.c.bf16 %v2018_v22, %v2017_v23 }
 0x180   : > { %v798_v26 = vpop.permute.xlu1 %797  ;;  %1712 = vmatmul.mubr.msk.f32.vlgmr.msra.gmra.mrb[0].mxu1 %vm279_vm0, %v2213_v31 }
 0x181   : > { %1929 = vmatpush3.bf16.msra.mxu0 %v1928_v24  ;;  %1939 = vmatpush3.bf16.xpose.msk.msra.mxu1 %vm2288_vm2, %v1937_v38 }
 0x182   : > { %1714 = vmatprep.mubr.msk.f32.mxu1 %vm2114_vm1, %v2110_v7  ;;  %1930 = vmatprep.subr.bf16.mxu0 %v2111_v25 }
 0x183   : > { %1940 = vmatprep.subr.bf16.mxu1 %v2111_v25 }
 0x184   : > { %v2021_v27 = vpop.permute.xlu1 %2020  ;;  %1715 = vmatmul.mubr.msk.f32.gmra.mrb[2].mxu1 %vm279_vm0, %v2215_v32  ;;  %v2349_v32 = vadd.f32 %v2271_v63, %v2211_v29 }
 0x185   : > { %v2023_v28 = vunpack.i.h.bf16 %v2021_v27  ;;  %v2022_v30 = vunpack.i.l.bf16 %v2021_v27  ;;  %1717 = vmatprep.mubr.msk.f32.mxu1 %vm2114_vm1, %v2110_v7 }
 0x187   : > { %v1931_v31 = vpack.c.bf16 %v2023_v28, %v2022_v30 }
 0x188   : > { %1718 = vmatmul.mubr.msk.f32.gmra.mrb[4].mxu1 %vm279_vm0, %v2230_v42 }
 0x189   : > { %1932 = vmatpush3.bf16.msra.mxu0 %v1931_v31  ;;  %1943 = vmatpush3.bf16.xpose.msk.msra.mxu1 %vm2288_vm2, %v1941_v49 }
 0x18a   : > { %1720 = vmatprep.mubr.msk.f32.mxu1 %vm2114_vm1, %v2110_v7  ;;  %1944 = vmatprep.subr.bf16.mxu1 %v2111_v25 }
 0x18b   : > { %1933 = vmatprep.subr.bf16.mxu0 %v2111_v25 }
 0x18c   : > { %1721 = vmatmul.mubr.msk.f32.gmra.mrb[6].mxu1 %vm279_vm0, %v2232_v43 }
 0x18d   : > { %1723 = vmatprep.mubr.msk.f32.mxu1 %vm2114_vm1, %v2110_v7 }
 0x190   : > { %1724 = vmatmul.mubr.msk.f32.gmra.mrb[8].mxu1 %vm279_vm0, %v2247_v53 }
 0x191   : > { %1947 = vmatpush3.bf16.xpose.msk.msra.mxu1 %vm2288_vm2, %v1945_v60  ;;  %1726 = vmatprep.mubr.msk.f32.mxu1 %vm2114_vm1, %v2110_v7 }
 0x192   : > { %1779 = vmatprep.subr.mxu1 %v2110_v7 }
 0x194   : > { %1727 = vmatmul.mubr.msk.f32.gmra.mrb[10].mxu1 %vm279_vm0, %v2249_v54 }
 0x195   : > { %1729 = vmatprep.mubr.msk.f32.mxu1 %vm2114_vm1, %v2110_v7 }
 0x198   : > { %1730 = vmatmul.mubr.msk.f32.gmra.mrb[12].mxu1 %vm279_vm0, %v2269_v62 }
 0x199   : > { %1780 = vmatpush3.xpose.msk.msra.mxu1 %vm279_vm0, %v2349_v32  ;;  %1781 = vmatprep.mubr.msk.f32.mxu1 %vm2114_vm1, %v2110_v7 }
 0x19a   : > { %1957 = vmatprep.subr.bf16.mxu1 %v2111_v25 }
 0x19c   : > { %1782 = vmatmul.mubr.msk.f32.vlgmr.msra.gmra.mrb[14].mxu1 %vm279_vm0, %v788_v10 }
 0x19d   : > { %1784 = vmatprep.mubr.msk.f32.mxu1 %vm2114_vm1, %v2110_v7 }
 0x1a0   : > { %1785 = vmatmul.mubr.msk.f32.gmra.mrb[16].mxu1 %vm279_vm0, %v790_v18 }
 0x1a1   : > { %1787 = vmatprep.mubr.msk.f32.mxu1 %vm2114_vm1, %v2110_v7 }
 0x1a4   : > { %1788 = vmatmul.mubr.msk.f32.gmra.mrb[18].mxu1 %vm279_vm0, %v792_v12 }
 0x1a5   : > { %1790 = vmatprep.mubr.msk.f32.mxu1 %vm2114_vm1, %v2110_v7 }
 0x1a8   : > { %1791 = vmatmul.mubr.msk.f32.gmra.mrb[20].mxu1 %vm279_vm0, %v794_v20 }
 0x1a9   : > { %1793 = vmatprep.mubr.msk.f32.mxu1 %vm2114_vm1, %v2110_v7 }
 0x1ac   : > { %1794 = vmatmul.mubr.msk.f32.gmra.mrb[22].mxu1 %vm279_vm0, %v796_v17 }
 0x1ad   : > { %1796 = vmatprep.mubr.msk.f32.mxu1 %vm2114_vm1, %v2110_v7 }
 0x1b0   : > { %1797 = vmatmul.mubr.msk.f32.gmra.mrb[24].mxu1 %vm279_vm0, %v798_v26 }
 0x1b1   : > { %1799 = vmatprep.mubr.msk.f32.mxu1 %vm2114_vm1, %v2110_v7 }
 0x1b4   : > { %1800 = vmatmul.mubr.msk.f32.gmra.mrb[26].mxu1 %vm279_vm0, %v800_v19 }
 0x1b5   : > { %1851 = vmatprep.mubr.msk.f32.mxu1 %vm2114_vm1, %v2110_v7 }
 0x253   : > { %v523_v29 = vpop.f32.mrb[0].mxu1 }
 0x254   : > { %v2379_v33 = vmul.f32 0.14285715, %v523_v29  ;;  %v1713_v36 = vpop.f32.mrb[1].mxu1 }
 0x256   : > { %v565_v38 = vsel %vm564_vm3, %v2379_v33, -inf }
 0x257   : > { %566 = vmax.xlane.f32.xlu1 %v565_v38  ;;  %v528_v39 = vpop.f32.mrb[2].mxu1 }
 0x258   : > { %v2383_v40 = vmul.f32 0.14285715, %v528_v39  ;;  %v1716_v41 = vpop.f32.mrb[3].mxu1 }
 0x25a   : > { %v568_v42 = vsel %vm564_vm3, %v2383_v40, -inf }
 0x25b   : > { %569 = vmax.xlane.f32.xlu0 %v568_v42  ;;  %v533_v43 = vpop.f32.mrb[4].mxu1 }
 0x25c   : > { %v2387_v44 = vmul.f32 0.14285715, %v533_v43  ;;  %v1719_v47 = vpop.f32.mrb[5].mxu1 }
 0x25e   : > { %v571_v49 = vsel %vm564_vm3, %v2387_v44, -inf }
 0x25f   : > { %572 = vmax.xlane.f32.xlu0 %v571_v49  ;;  %v538_v50 = vpop.f32.mrb[6].mxu1 }
 0x260   : > { %v2391_v51 = vmul.f32 0.14285715, %v538_v50  ;;  %v1722_v52 = vpop.f32.mrb[7].mxu1 }
 0x262   : > { %v574_v53 = vsel %vm564_vm3, %v2391_v51, -inf }
 0x263   : > { %575 = vmax.xlane.f32.xlu1 %v574_v53  ;;  %v543_v54 = vpop.f32.mrb[8].mxu1 }
 0x264   : > { %v2395_v55 = vmul.f32 0.14285715, %v543_v54  ;;  %v1725_v60 = vpop.f32.mrb[9].mxu1 }
 0x266   : > { %v577_v61 = vsel %vm564_vm3, %v2395_v55, -inf }
 0x267   : > { %578 = vmax.xlane.f32.xlu1 %v577_v61  ;;  %v548_v63 = vpop.f32.mrb[10].mxu1 }
 0x268   : > { %v1728_v0 = vpop.f32.mrb[11].mxu1 }
 0x26b   : > { %v553_v1 = vpop.f32.mrb[12].mxu1 }
 0x26c   : > { %v1731_v2 = vpop.f32.mrb[13].mxu1  ;;  %v2413_v17 = vmul.f32 0.14285715, %v553_v1 }
 0x26f   : > { %v902_v3 = vpop.f32.mrb[14].mxu1 }
 0x270   : > { %v1783_v4 = vpop.f32.mrb[15].mxu1  ;;  %v2415_v34 = vmul.f32 0.14285715, %v902_v3 }
 0x272   : > { %v943_v46 = vsel %vm564_vm3, %v2415_v34, -inf }
 0x273   : > { %v907_v5 = vpop.f32.mrb[16].mxu1 }
 0x274   : > { %v1786_v6 = vpop.f32.mrb[17].mxu1  ;;  %v2421_v45 = vmul.f32 0.14285715, %v907_v5 }
 0x275   : > { %641 = vrot.lane.b32.xlu0 %v2269_v62, %s2115_s25 }
 0x276   : > { %v946_v18 = vsel %vm564_vm3, %v2421_v45, -inf }
 0x277   : > { %v912_v8 = vpop.f32.mrb[18].mxu1 }
 0x278   : > { %2025 = vrot.lane.b32.xlu1 %v2260_v58, %s2115_s25  ;;  %v1789_v9 = vpop.f32.mrb[19].mxu1  ;;  %v2411_v58 = vmul.f32 0.14285715, %v548_v63 }
 0x279   : > { %2030 = vrot.lane.b32.xlu0 %v2029_v37, %s2112_s23  ;;  %v584_v37 = vsel %vm583_vm4, %v2413_v17, -inf }
 0x27a   : > { %v580_v35 = vsel %vm564_vm3, %v2411_v58, -inf }
 0x27b   : > { %v917_v10 = vpop.f32.mrb[20].mxu1 }
 0x27c   : > { %v1792_v11 = vpop.f32.mrb[21].mxu1  ;;  %v2429_v19 = vmul.f32 0.14285715, %v917_v10 }
 0x27d   : > { %2035 = vrot.lane.b32.xlu0 %v2034_v48, %s2112_s23  ;;  %v2425_v48 = vmul.f32 0.14285715, %v912_v8 }
 0x27e   : > { %v952_v22 = vsel %vm564_vm3, %v2429_v19, -inf }
 0x27f   : > { %v922_v12 = vpop.f32.mrb[22].mxu1  ;;  %v949_v20 = vsel %vm564_vm3, %v2425_v48, -inf }
 0x280   : > { %v1795_v13 = vpop.f32.mrb[23].mxu1  ;;  %v2433_v21 = vmul.f32 0.14285715, %v922_v12 }
 0x282   : > { %v955_v24 = vsel %vm564_vm3, %v2433_v21, -inf }
 0x283   : > { %v927_v62 = vpop.f32.mrb[24].mxu1 }
 0x284   : > { %v1798_v14 = vpop.f32.mrb[25].mxu1  ;;  %v2437_v23 = vmul.f32 0.14285715, %v927_v62 }
 0x286   : > { %v958_v27 = vsel %vm564_vm3, %v2437_v23, -inf }
 0x287   : > { %v932_v15 = vpop.f32.mrb[26].mxu1 }
 0x288   : > { %v1801_v16 = vpop.f32.mrb[27].mxu1  ;;  %v2445_v26 = vmul.f32 0.14285715, %v932_v15 }
 0x28a   : > { %v961_v28 = vsel %vm583_vm4, %v2445_v26, -inf }
 0x29c   : > { %581 = vmax.xlane.f32.xlu0 %v580_v35  ;;  %585 = vmax.xlane.f32.xlu1 %v584_v37 }
 0x2a0   : > { %944 = vmax.xlane.f32.xlu1 %v943_v46 }
 0x2a4   : > { %947 = vmax.xlane.f32.xlu1 %v946_v18 }
 0x2a8   : > { %950 = vmax.xlane.f32.xlu1 %v949_v20 }
 0x2ac   : > { %953 = vmax.xlane.f32.xlu1 %v952_v22 }
 0x2b0   : > { %956 = vmax.xlane.f32.xlu1 %v955_v24 }
 0x2b2   : > { %2040 = vrot.lane.b32.xlu0 %v2039_v59, %s2112_s23 }
 0x2b4   : > { %959 = vmax.xlane.f32.xlu1 %v958_v27 }
 0x2b6   : > { %1018 = vrot.lane.b32.xlu0 %v2349_v32, %s2112_s23 }
 0x2b8   : > { %962 = vmax.xlane.f32.xlu1 %v961_v28 }
 0x2e4   : > { %v567_v31 = vpop.xlane.xlu1 %566 }
 0x2e5   : > { %v587_v36 = vsub.f32 %v2379_v33, %v567_v31 }
 0x2e7   : > { %v594_v59 = vmul.f32 1.442695, %v587_v36 }
 0x2e8   : > { %v570_v30 = vpop.xlane.xlu0 %569 }
 0x2e9   : > { %v588_v38 = vsub.f32 %v2383_v40, %v570_v30  ;;  %2046 = vpow2.f32 %v594_v59 }
 0x2eb   : > { %v596_v41 = vmul.f32 1.442695, %v588_v38 }
 0x2ec   : > { %v573_v29 = vpop.xlane.xlu0 %572 }
 0x2ed   : > { %v589_v42 = vsub.f32 %v2387_v44, %v573_v29  ;;  %2048 = vpow2.f32 %v596_v41 }
 0x2ef   : > { %v598_v50 = vmul.f32 1.442695, %v589_v42 }
 0x2f0   : > { %v576_v56 = vpop.xlane.xlu1 %575  ;;  %v642_v57 = vpop.permute.xlu0 %641 }
 0x2f1   : > { %v590_v52 = vsub.f32 %v2391_v51, %v576_v56  ;;  %2050 = vpow2.f32 %v598_v50 }
 0x2f3   : > { %v600_v40 = vmul.f32 1.442695, %v590_v52  ;;  %v2459_v61 = vpop.eup %2046 }
 0x2f4   : > { %v579_v39 = vpop.xlane.xlu1 %578  ;;  %v2031_v43 = vpop.permute.xlu0 %2030  ;;  %v608_v59 = vsel %vm564_vm3, %v2459_v61, 0.0 }
 0x2f5   : > { %v2033_v33 = vunpack.i.h.bf16 %v2031_v43  ;;  %v2032_v54 = vunpack.i.l.bf16 %v2031_v43  ;;  %v591_v44 = vsub.f32 %v2395_v55, %v579_v39  ;;  %2052 = vpow2.f32 %v600_v40 }
 0x2f7   : > { %v1949_v63 = vpack.c.bf16 %v2033_v33, %v2032_v54  ;;  %v602_v51 = vmul.f32 1.442695, %v591_v44  ;;  %v2468_v55 = vpop.eup %2048 }
 0x2f8   : > { %v2026_v32 = vpop.permute.xlu1 %2025  ;;  %v2036_v60 = vpop.permute.xlu0 %2035  ;;  %v611_v42 = vsel %vm564_vm3, %v2468_v55, 0.0 }
 0x2f9   : > { %v2028_v47 = vunpack.i.h.bf16 %v2026_v32  ;;  %v2027_v49 = vunpack.i.l.bf16 %v2026_v32  ;;  %v2038_v0 = vunpack.i.h.bf16 %v2036_v60  ;;  %v2037_v1 = vunpack.i.l.bf16 %v2036_v60 }
 0x2fa   : > { %2054 = vpow2.f32 %v602_v51  ;;  %v1425_v51 = vld [vmem:[%s2712_s5] sm:$0xff] }
 0x2fb   : > { %v1934_v53 = vpack.c.bf16 %v2028_v47, %v2027_v49  ;;  %v1952_v2 = vpack.c.bf16 %v2038_v0, %v2037_v1  ;;  %v2475_v3 = vpop.eup %2050 }
 0x2fc   : > { %v614_v49 = vsel %vm564_vm3, %v2475_v3, 0.0 }
 0x2fd   : > { %1935 = vmatpush3.bf16.msra.mxu0 %v1934_v53 }
 0x2fe   : > { %1744 = vmatprep.subr.mxu0 %v2110_v7 }
 0x2ff   : > { %v2053_v4 = vpop.eup %2052 }
 0x300   : > { %v617_v41 = vsel %vm564_vm3, %v2053_v4, 0.0 }
 0x301   : > { %1745 = vmatpush3.msk.msra.mxu0 %vm670_vm5, %v642_v57 }
 0x302   : > { %1747 = vmatmul.mubr.msk.f32.vlgmr.msra.gmra.mrb[14].mxu0 %vm564_vm3, %v2459_v61  ;;  %1948 = vmatprep.subr.bf16.mxu0 %v2111_v25 }
 0x303   : > { %1950 = vmatpush3.bf16.msra.mxu0 %v1949_v63  ;;  %1749 = vmatprep.mubr.msk.f32.mxu0 %vm2114_vm1, %v2110_v7 }
 0x304   : > { %1951 = vmatprep.subr.bf16.mxu0 %v2111_v25  ;;  %v2484_v5 = vpop.eup %2054 }
 0x305   : > { %v620_v47 = vsel %vm564_vm3, %v2484_v5, 0.0 }
 0x306   : > { %1750 = vmatmul.mubr.msk.f32.gmra.mrb[16].mxu0 %vm564_vm3, %v2468_v55 }
 0x307   : > { %1953 = vmatpush3.bf16.msra.mxu0 %v1952_v2  ;;  %1752 = vmatprep.mubr.msk.f32.mxu0 %vm2114_vm1, %v2110_v7 }
 0x308   : > { %1954 = vmatprep.subr.bf16.mxu0 %v2111_v25 }
 0x30a   : > { %1753 = vmatmul.mubr.msk.f32.gmra.mrb[18].mxu0 %vm564_vm3, %v2475_v3  ;;  %v2116_v3 = vmov 0  }
 0x30b   : > { %1755 = vmatprep.mubr.msk.f32.mxu0 %vm2114_vm1, %v2110_v7  ;;  %2044 = vset.pattern.permute.xlu1 %v2116_v3 }
 0x30c   : > { %2045 = vset.pattern.permute.xlu0 %v2116_v3 }
 0x30e   : > { %1756 = vmatmul.mubr.msk.f32.gmra.mrb[20].mxu0 %vm564_vm3, %v2053_v4  ;;  %v1426_v4 = vld [vmem:[%s2712_s5 + $0x8] sm:$0xff] }
 0x30f   : > { %1758 = vmatprep.mubr.msk.f32.mxu0 %vm2114_vm1, %v2110_v7 }
 0x312   : > { %1759 = vmatmul.mubr.msk.f32.gmra.mrb[22].mxu0 %vm564_vm3, %v2484_v5  ;;  %v1427_v5 = vld [vmem:[%s2712_s5 + $0x10] sm:$0xff] }
 0x313   : > { %1761 = vmatprep.mubr.msk.f32.mxu0 %vm2114_vm1, %v2110_v7 }
 0x329   : > { %v582_v6 = vpop.xlane.xlu0 %581  ;;  %v586_v8 = vpop.xlane.xlu1 %585 }
 0x32a   : > { %v592_v9 = vsub.f32 %v2411_v58, %v582_v6  ;;  %v593_v10 = vsub.f32 %v2413_v17, %v586_v8 }
 0x32c   : > { %v604_v11 = vmul.f32 1.442695, %v592_v9  ;;  %v606_v12 = vmul.f32 1.442695, %v593_v10  ;;  %v1428_v9 = vld [vmem:[%s2712_s5 + $0x18] sm:$0xff] }
 0x32d   : > { %v2041_v13 = vpop.permute.xlu0 %2040  ;;  %v945_v62 = vpop.xlane.xlu1 %944 }
 0x32e   : > { %2056 = vpow2.f32 %v604_v11  ;;  %v2043_v14 = vunpack.i.h.bf16 %v2041_v13  ;;  %v2042_v15 = vunpack.i.l.bf16 %v2041_v13  ;;  %v964_v16 = vsub.f32 %v2415_v34, %v945_v62  ;;  %v1429_v13 = vld [vmem:[%s2712_s5 + $0x20] sm:$0xff] }
 0x32f   : > { %2058 = vpow2.f32 %v606_v12 }
 0x330   : > { %v1955_v35 = vpack.c.bf16 %v2043_v14, %v2042_v15  ;;  %v971_v37 = vmul.f32 1.442695, %v964_v16  ;;  %v1430_v16 = vld [vmem:[%s2712_s5 + $0x28] sm:$0xff] }
 0x331   : > { %v948_v46 = vpop.xlane.xlu1 %947  ;;  %v1019_v17 = vpop.permute.xlu0 %1018 }
 0x332   : > { %2060 = vpow2.f32 %v971_v37  ;;  %v965_v18 = vsub.f32 %v2421_v45, %v948_v46  ;;  %1956 = vmatpush3.bf16.msra.mxu0 %v1955_v35 }
 0x333   : > { %1814 = vmatprep.subr.mxu0 %v2110_v7 }
 0x334   : > { %v973_v58 = vmul.f32 1.442695, %v965_v18 }
 0x335   : > { %v951_v20 = vpop.xlane.xlu1 %950 }
 0x336   : > { %2062 = vpow2.f32 %v973_v58  ;;  %v966_v22 = vsub.f32 %v2425_v48, %v951_v20  ;;  %1815 = vmatpush3.msk.msra.mxu0 %vm670_vm5, %v1019_v17  ;;  %v1431_v20 = vld [vmem:[%s2712_s5 + $0x30] sm:$0x3] }
 0x337   : > { %1966 = vmatprep.subr.bf16.mxu0 %v2111_v25 }
 0x338   : > { %v2498_v34 = vpop.eup %2056  ;;  %v975_v45 = vmul.f32 1.442695, %v966_v22 }
 0x339   : > { %1762 = vmatmul.mubr.msk.f32.gmra.mrb[24].mxu0 %vm564_vm3, %v2498_v34  ;;  %v954_v24 = vpop.xlane.xlu1 %953  ;;  %v2059_v28 = vpop.eup %2058  ;;  %v623_v0 = vsel %vm564_vm3, %v2498_v34, 0.0 }
 0x33a   : > { %v967_v27 = vsub.f32 %v2429_v19, %v954_v24  ;;  %1764 = vmatprep.mubr.msk.f32.mxu0 %vm2114_vm1, %v2110_v7  ;;  %2064 = vpow2.f32 %v975_v45  ;;  %v626_v52 = vsel %vm583_vm4, %v2059_v28, 0.0 }
 0x33c   : > { %v2061_v30 = vpop.eup %2060  ;;  %v977_v29 = vmul.f32 1.442695, %v967_v27 }
 0x33d   : > { %1765 = vmatmul.mubr.msk.f32.gmra.mrb[26].mxu0 %vm564_vm3, %v2059_v28  ;;  %v957_v48 = vpop.xlane.xlu1 %956  ;;  %v985_v31 = vsel %vm564_vm3, %v2061_v30, 0.0 }
 0x33e   : > { %v968_v36 = vsub.f32 %v2433_v21, %v957_v48  ;;  %986 = vadd.xlane.f32.xlu1 %v985_v31  ;;  %1816 = vmatprep.mubr.msk.f32.mxu0 %vm2114_vm1, %v2110_v7  ;;  %2066 = vpow2.f32 %v977_v29 }
 0x340   : > { %v2063_v56 = vpop.eup %2062  ;;  %v979_v38 = vmul.f32 1.442695, %v968_v36 }
 0x341   : > { %1817 = vmatmul.mubr.msk.f32.vlgmr.msra.gmra.mrb[28].mxu0 %vm564_vm3, %v2061_v30  ;;  %v960_v19 = vpop.xlane.xlu1 %959  ;;  %v988_v57 = vsel %vm564_vm3, %v2063_v56, 0.0 }
 0x342   : > { %v969_v39 = vsub.f32 %v2437_v23, %v960_v19  ;;  %989 = vadd.xlane.f32.xlu0 %v988_v57  ;;  %609 = vadd.xlane.f32.xlu1 %v608_v59  ;;  %2068 = vpow2.f32 %v979_v38 }
 0x343   : > { %1819 = vmatprep.mubr.msk.f32.mxu0 %vm2114_vm1, %v2110_v7 }
 0x344   : > { %v981_v32 = vmul.f32 1.442695, %v969_v39  ;;  %v2065_v23 = vpop.eup %2064 }
 0x345   : > { %1820 = vmatmul.mubr.msk.f32.gmra.mrb[30].mxu0 %vm564_vm3, %v2063_v56  ;;  %v963_v21 = vpop.xlane.xlu1 %962  ;;  %v991_v53 = vsel %vm564_vm3, %v2065_v23, 0.0 }
 0x346   : > { %v970_v43 = vsub.f32 %v2445_v26, %v963_v21  ;;  %618 = vadd.xlane.f32.xlu0 %v617_v41  ;;  %612 = vadd.xlane.f32.xlu1 %v611_v42  ;;  %2070 = vpow2.f32 %v981_v32 }
 0x347   : > { %1822 = vmatprep.mubr.msk.f32.mxu0 %vm2114_vm1, %v2110_v7 }
 0x348   : > { %v983_v50 = vmul.f32 1.442695, %v970_v43  ;;  %v2067_v26 = vpop.eup %2066 }
 0x349   : > { %1823 = vmatmul.mubr.msk.f32.gmra.mrb[32].mxu0 %vm564_vm3, %v2065_v23  ;;  %v994_v54 = vsel %vm564_vm3, %v2067_v26, 0.0 }
 0x34a   : > { %621 = vadd.xlane.f32.xlu0 %v620_v47  ;;  %615 = vadd.xlane.f32.xlu1 %v614_v49  ;;  %2072 = vpow2.f32 %v983_v50 }
 0x34b   : > { %1825 = vmatprep.mubr.msk.f32.mxu0 %vm2114_vm1, %v2110_v7 }
 0x34c   : > { %v2069_v33 = vpop.eup %2068 }
 0x34d   : > { %1826 = vmatmul.mubr.msk.f32.gmra.mrb[34].mxu0 %vm564_vm3, %v2067_v26  ;;  %v997_v40 = vsel %vm564_vm3, %v2069_v33, 0.0 }
 0x34e   : > { %627 = vadd.xlane.f32.xlu0 %v626_v52  ;;  %992 = vadd.xlane.f32.xlu1 %v991_v53  ;;  %v1163_v53 = vld [vmem:[%s2710_s3] sm:$0xff] }
 0x34f   : > { %1828 = vmatprep.mubr.msk.f32.mxu0 %vm2114_vm1, %v2110_v7 }
 0x350   : > { %v2071_v60 = vpop.eup %2070 }
 0x351   : > { %1829 = vmatmul.mubr.msk.f32.gmra.mrb[36].mxu0 %vm564_vm3, %v2069_v33  ;;  %v1000_v61 = vsel %vm564_vm3, %v2071_v60, 0.0 }
 0x352   : > { %995 = vadd.xlane.f32.xlu1 %v994_v54  ;;  %1831 = vmatprep.mubr.msk.f32.mxu0 %vm2114_vm1, %v2110_v7 }
 0x354   : > { %v2073_v44 = vpop.eup %2072 }
 0x355   : > { %1832 = vmatmul.mubr.msk.f32.gmra.mrb[38].mxu0 %vm564_vm3, %v2071_v60  ;;  %v1003_v63 = vsel %vm583_vm4, %v2073_v44, 0.0 }
 0x356   : > { %998 = vadd.xlane.f32.xlu1 %v997_v40  ;;  %1834 = vmatprep.mubr.msk.f32.mxu0 %vm2114_vm1, %v2110_v7 }
 0x359   : > { %1835 = vmatmul.mubr.msk.f32.gmra.mrb[40].mxu0 %vm564_vm3, %v2073_v44  ;;  %v1164_v44 = vld [vmem:[%s2710_s3 + $0x8] sm:$0xff] }
 0x35a   : > { %1001 = vadd.xlane.f32.xlu1 %v1000_v61  ;;  %1886 = vmatprep.mubr.msk.f32.mxu0 %vm2114_vm1, %v2110_v7 }
 0x35e   : > { %1004 = vadd.xlane.f32.xlu1 %v1003_v63 }
 0x362   : > { %624 = vadd.xlane.f32.xlu1 %v623_v0 }
 0x364   : > { %1439 = vperm.xlu0 %2045, %v1426_v4  }
 0x373   : > { %1434 = vperm.xlu1 %2044, %v1425_v51  }
 0x377   : > { %1444 = vperm.xlu1 %2044, %v1427_v5   ;;  %v1166_v5 = vld [vmem:[%s2710_s3 + $0x18] sm:$0xff] }
 0x37b   : > { %1449 = vperm.xlu1 %2044, %v1428_v9  }
 0x37f   : > { %1454 = vperm.xlu1 %2044, %v1429_v13   ;;  %v1167_v13 = vld [vmem:[%s2710_s3 + $0x20] sm:$0xff] }
 0x383   : > { %1459 = vperm.xlu1 %2044, %v1430_v16   ;;  %v1168_v16 = vld [vmem:[%s2710_s3 + $0x28] sm:$0xff] }
 0x387   : > { %1464 = vperm.xlu1 %2044, %v1431_v20  }
 0x3cb   : > { %v987_v1 = vpop.xlane.xlu1 %986 }
 0x3cf   : > { %v2554_v55 = vpop.xlane.xlu0 %989  ;;  %v610_v2 = vpop.xlane.xlu1 %609 }
 0x3d0   : > { %2074 = vrcp.f32 %v610_v2 }
 0x3d3   : > { %v613_v6 = vpop.xlane.xlu1 %612  ;;  %v619_v8 = vpop.xlane.xlu0 %618 }
 0x3d4   : > { %2076 = vrcp.f32 %v613_v6 }
 0x3d5   : > { %v739_v10 = vpop.f32.mrb[14].mxu0  ;;  %2078 = vrcp.f32 %v619_v8 }
 0x3d6   : > { %v1748_v11 = vpop.f32.mrb[15].mxu0 }
 0x3d7   : > { %v616_v12 = vpop.xlane.xlu1 %615  ;;  %v622_v59 = vpop.xlane.xlu0 %621 }
 0x3d8   : > { %2080 = vrcp.f32 %v616_v12 }
 0x3d9   : > { %v744_v62 = vpop.f32.mrb[16].mxu0  ;;  %2082 = vrcp.f32 %v622_v59 }
 0x3da   : > { %v1751_v14 = vpop.f32.mrb[17].mxu0  ;;  %v2075_v15 = vpop.eup %2074 }
 0x3db   : > { %v780_v18 = vmul.f32 %v2075_v15, %v739_v10  ;;  %v993_v17 = vpop.xlane.xlu1 %992  ;;  %v628_v39 = vpop.xlane.xlu0 %627 }
 0x3dd   : > { %v749_v35 = vpop.f32.mrb[18].mxu0 }
 0x3de   : > { %v2077_v37 = vpop.eup %2076  ;;  %v1754_v46 = vpop.f32.mrb[19].mxu0 }
 0x3df   : > { %v781_v58 = vmul.f32 %v2077_v37, %v744_v62  ;;  %v2079_v22 = vpop.eup %2078  ;;  %v996_v29 = vpop.xlane.xlu1 %995 }
 0x3e1   : > { %v2574_v34 = vpack.c.bf16 %v781_v58, %v780_v18  ;;  %v754_v24 = vpop.f32.mrb[20].mxu0 }
 0x3e2   : > { %v2081_v45 = vpop.eup %2080  ;;  %v783_v27 = vmul.f32 %v2079_v22, %v754_v24  ;;  %v1757_v28 = vpop.f32.mrb[21].mxu0 }
 0x3e3   : > { %v782_v30 = vmul.f32 %v2081_v45, %v749_v35  ;;  %1968 = vmatpush3.bf16.msra.mxu0 %v2574_v34  ;;  %v999_v56 = vpop.xlane.xlu1 %998  ;;  %v2083_v21 = vpop.eup %2082  ;;  %v1171_v28 = vld [vmem:[%s2711_s4 + $0x8] sm:$0xff] }
 0x3e4   : > { %1969 = vmatprep.subr.bf16.mxu0 %v2111_v25 }
 0x3e5   : > { %v2578_v48 = vpack.c.bf16 %v783_v27, %v782_v30  ;;  %v759_v31 = vpop.f32.mrb[22].mxu0  ;;  %v1170_v27 = vld [vmem:[%s2711_s4] sm:$0xff]  ;;  %v1173_v30 = vld [vmem:[%s2711_s4 + $0x18] sm:$0xff] }
 0x3e6   : > { %v1760_v36 = vpop.f32.mrb[23].mxu0  ;;  %v784_v32 = vmul.f32 %v2083_v21, %v759_v31  ;;  %v1176_v31 = vld [vmem:[%s2711_s4 + $0x30] sm:$0x3] }
 0x3e7   : > { %1971 = vmatpush3.bf16.msra.mxu0 %v2578_v48  ;;  %v1002_v19 = vpop.xlane.xlu1 %1001 }
 0x3e8   : > { %1972 = vmatprep.subr.bf16.mxu0 %v2111_v25 }
 0x3eb   : > { %v1005_v57 = vpop.xlane.xlu1 %1004 }
 0x3ef   : > { %v625_v38 = vpop.xlane.xlu1 %624 }
 0x3f0   : > { %2084 = vrcp.f32 %v625_v38 }
 0x3f1   : > { %2086 = vrcp.f32 %v628_v39 }
 0x3f2   : > { %2088 = vrcp.f32 %v987_v1 }
 0x3f3   : > { %2090 = vrcp.f32 %v2554_v55  ;;  %v1165_v55 = vld [vmem:[%s2710_s3 + $0x10] sm:$0xff] }
 0x3f4   : > { %2092 = vrcp.f32 %v993_v17 }
 0x3f5   : > { %2094 = vrcp.f32 %v996_v29  ;;  %v1169_v29 = vld [vmem:[%s2710_s3 + $0x30] sm:$0x3] }
 0x3f6   : > { %2096 = vrcp.f32 %v999_v56 }
 0x3f7   : > { %2098 = vrcp.f32 %v1002_v19 }
 0x3f8   : > { %2100 = vrcp.f32 %v1005_v57 }
 0x3fa   : > { %v2085_v41 = vpop.eup %2084 }
 0x3fb   : > { %v2087_v26 = vpop.eup %2086 }
 0x3fc   : > { %v2089_v33 = vpop.eup %2088 }
 0x3fd   : > { %v2091_v61 = vpop.eup %2090 }
 0x3fe   : > { %v2093_v4 = vpop.eup %2092 }
 0x3ff   : > { %v2095_v6 = vpop.eup %2094 }
 0x400   : > { %v2097_v15 = vpop.eup %2096 }
 0x401   : > { %v2099_v35 = vpop.eup %2098 }
 0x402   : > { %v2101_v24 = vpop.eup %2100 }
 0x40c   : > { %v764_v42 = vpop.f32.mrb[24].mxu0 }
 0x40d   : > { %v785_v43 = vmul.f32 %v2085_v41, %v764_v42  ;;  %v1763_v23 = vpop.f32.mrb[25].mxu0 }
 0x40f   : > { %v2583_v47 = vpack.c.bf16 %v785_v43, %v784_v32 }
 0x410   : > { %v769_v49 = vpop.f32.mrb[26].mxu0 }
 0x411   : > { %v1766_v50 = vpop.f32.mrb[27].mxu0  ;;  %1974 = vmatpush3.bf16.msra.mxu0 %v2583_v47  ;;  %v2587_v52 = vmul.f32 %v2087_v26, %v769_v49 }
 0x412   : > { %1884 = vmatprep.subr.mxu0 %v2110_v7 }
 0x414   : > { %v1115_v54 = vpop.f32.mrb[28].mxu0 }
 0x415   : > { %v1156_v60 = vmul.f32 %v2089_v33, %v1115_v54  ;;  %v1818_v40 = vpop.f32.mrb[29].mxu0  ;;  %1885 = vmatpush3.msk.msra.mxu0 %vm670_vm5, %v2587_v52 }
 0x416   : > { %1887 = vmatmul.mubr.msk.f32.vlgmr.msra.gmra.mrb[42].mxu0 %vm564_vm3, %v1163_v53  ;;  %v1440_v53 = vpop.permute.xlu0 %1439 }
 0x417   : > { %1889 = vmatprep.mubr.msk.f32.mxu0 %vm2114_vm1, %v2110_v7 }
 0x418   : > { %v1120_v63 = vpop.f32.mrb[30].mxu0 }
 0x419   : > { %v1157_v0 = vmul.f32 %v2091_v61, %v1120_v63  ;;  %v1821_v1 = vpop.f32.mrb[31].mxu0 }
 0x41a   : > { %1890 = vmatmul.mubr.msk.f32.gmra.mrb[44].mxu0 %vm564_vm3, %v1164_v44 }
 0x41b   : > { %v1958_v51 = vpack.c.bf16 %v1157_v0, %v1156_v60  ;;  %1892 = vmatprep.mubr.msk.f32.mxu0 %vm2114_vm1, %v2110_v7 }
 0x41c   : > { %v1125_v2 = vpop.f32.mrb[32].mxu0 }
 0x41d   : > { %v1824_v3 = vpop.f32.mrb[33].mxu0  ;;  %1959 = vmatpush3.bf16.msra.mxu1 %v1958_v51  ;;  %v1158_v9 = vmul.f32 %v2093_v4, %v1125_v2 }
 0x41e   : > { %1960 = vmatprep.subr.bf16.mxu1 %v2111_v25  ;;  %1893 = vmatmul.mubr.msk.f32.gmra.mrb[46].mxu0 %vm564_vm3, %v1165_v55 }
 0x41f   : > { %1895 = vmatprep.mubr.msk.f32.mxu0 %vm2114_vm1, %v2110_v7 }
 0x420   : > { %v1130_v8 = vpop.f32.mrb[34].mxu0 }
 0x421   : > { %v1159_v10 = vmul.f32 %v2095_v6, %v1130_v8  ;;  %v1827_v11 = vpop.f32.mrb[35].mxu0 }
 0x422   : > { %1896 = vmatmul.mubr.msk.f32.gmra.mrb[48].mxu0 %vm564_vm3, %v1166_v5 }
 0x423   : > { %v1961_v12 = vpack.c.bf16 %v1159_v10, %v1158_v9  ;;  %1898 = vmatprep.mubr.msk.f32.mxu0 %vm2114_vm1, %v2110_v7 }
 0x424   : > { %v1135_v62 = vpop.f32.mrb[36].mxu0 }
 0x425   : > { %v1830_v14 = vpop.f32.mrb[37].mxu0  ;;  %1962 = vmatpush3.bf16.msra.mxu1 %v1961_v12  ;;  %v1160_v46 = vmul.f32 %v2097_v15, %v1135_v62 }
 0x426   : > { %1963 = vmatprep.subr.bf16.mxu1 %v2111_v25  ;;  %1899 = vmatmul.mubr.msk.f32.gmra.mrb[50].mxu0 %vm564_vm3, %v1167_v13 }
 0x427   : > { %1901 = vmatprep.mubr.msk.f32.mxu0 %vm2114_vm1, %v2110_v7 }
 0x428   : > { %v1140_v37 = vpop.f32.mrb[38].mxu0 }
 0x429   : > { %v1161_v18 = vmul.f32 %v2099_v35, %v1140_v37  ;;  %v1833_v58 = vpop.f32.mrb[39].mxu0 }
 0x42a   : > { %1902 = vmatmul.mubr.msk.f32.gmra.mrb[52].mxu0 %vm564_vm3, %v1168_v16 }
 0x42b   : > { %v1964_v17 = vpack.c.bf16 %v1161_v18, %v1160_v46 }
 0x42c   : > { %v1145_v20 = vpop.f32.mrb[40].mxu0 }
 0x42d   : > { %v1836_v22 = vpop.f32.mrb[41].mxu0  ;;  %1965 = vmatpush3.bf16.msra.mxu1 %v1964_v17  ;;  %v1162_v45 = vmul.f32 %v2101_v24, %v1145_v20 }
 0x42e   : > { %1849 = vmatprep.subr.mxu1 %v2110_v7 }
 0x431   : > { %1850 = vmatpush3.msk.msra.mxu1 %vm670_vm5, %v1162_v45 }
 0x432   : > { %1852 = vmatmul.mubr.msk.f32.vlgmr.msra.gmra.mrb[28].mxu1 %vm564_vm3, %v1170_v27  ;;  %1975 = vmatprep.subr.bf16.mxu1 %v2111_v25 }
 0x433   : > { %1979 = vmatpush3.bf16.msra.mxu1 %v2574_v34  ;;  %1854 = vmatprep.mubr.msk.f32.mxu1 %vm2114_vm1, %v2110_v7  ;;  %v1172_v34 = vld [vmem:[%s2711_s4 + $0x10] sm:$0xff] }
 0x434   : > { %1976 = vmatprep.subr.bf16.mxu1 %v2111_v25 }
 0x436   : > { %1855 = vmatmul.mubr.msk.f32.gmra.mrb[30].mxu1 %vm564_vm3, %v1171_v28 }
 0x437   : > { %1980 = vmatpush3.bf16.msra.mxu1 %v2578_v48  ;;  %1857 = vmatprep.mubr.msk.f32.mxu1 %vm2114_vm1, %v2110_v7  ;;  %v1175_v48 = vld [vmem:[%s2711_s4 + $0x28] sm:$0xff] }
 0x438   : > { %1977 = vmatprep.subr.bf16.mxu1 %v2111_v25  ;;  %v1174_v25 = vld [vmem:[%s2711_s4 + $0x20] sm:$0xff] }
 0x43a   : > { %1858 = vmatmul.mubr.msk.f32.gmra.mrb[32].mxu1 %vm564_vm3, %v1172_v34 }
 0x43b   : > { %1981 = vmatpush3.bf16.msra.mxu1 %v2583_v47  ;;  %1860 = vmatprep.mubr.msk.f32.mxu1 %vm2114_vm1, %v2110_v7 }
 0x43c   : > { %1978 = vmatprep.subr.mxu1 %v2110_v7 }
 0x43e   : > { %1861 = vmatmul.mubr.msk.f32.gmra.mrb[34].mxu1 %vm564_vm3, %v1173_v30 }
 0x43f   : > { %1982 = vmatpush3.msk.msra.mxu1 %vm670_vm5, %v2587_v52  ;;  %1863 = vmatprep.mubr.msk.f32.mxu1 %vm2114_vm1, %v2110_v7 }
 0x442   : > { %1864 = vmatmul.mubr.msk.f32.gmra.mrb[36].mxu1 %vm564_vm3, %v1174_v25 }
 0x443   : > { %1866 = vmatprep.mubr.msk.f32.mxu1 %vm2114_vm1, %v2110_v7 }
 0x446   : > { %1867 = vmatmul.mubr.msk.f32.gmra.mrb[38].mxu1 %vm564_vm3, %v1175_v48 }
 0x447   : > { %1869 = vmatprep.mubr.msk.f32.mxu1 %vm2114_vm1, %v2110_v7 }
 0x44a   : > { %1870 = vmatmul.mubr.msk.f32.gmra.mrb[40].mxu1 %vm564_vm3, %v1176_v31 }
 0x44b   : > { %1904 = vmatprep.mubr.msk.f32.mxu1 %vm2114_vm1, %v2110_v7  ;;  %v1435_v7 = vpop.permute.xlu1 %1434 }
 0x44e   : > { %1905 = vmatmul.mubr.msk.f32.vlgmr.msra.gmra.mrb[42].mxu1 %vm564_vm3, %v1169_v29 }
 0x44f   : > { %v1445_v50 = vpop.permute.xlu1 %1444 }
 0x453   : > { %v1450_v63 = vpop.permute.xlu1 %1449 }
 0x457   : > { %v1455_v3 = vpop.permute.xlu1 %1454 }
 0x45b   : > { %v1460_v12 = vpop.permute.xlu1 %1459 }
 0x45f   : > { %v1465_v37 = vpop.permute.xlu1 %1464 }
 0x4e9   : > { %v1391_v36 = vpop.f32.mrb[42].mxu0 }
 0x4ea   : > { %v1888_v56 = vpop.f32.mrb[43].mxu0 }
 0x4ed   : > { %v1396_v19 = vpop.f32.mrb[44].mxu0 }
 0x4ee   : > { %v1891_v57 = vpop.f32.mrb[45].mxu0 }
 0x4f1   : > { %v1401_v59 = vpop.f32.mrb[46].mxu0 }
 0x4f2   : > { %v1894_v38 = vpop.f32.mrb[47].mxu0 }
 0x4f5   : > { %v1406_v39 = vpop.f32.mrb[48].mxu0 }
 0x4f6   : > { %v1897_v21 = vpop.f32.mrb[49].mxu0 }
 0x4f9   : > { %v1411_v41 = vpop.f32.mrb[50].mxu0 }
 0x4fa   : > { %v1900_v42 = vpop.f32.mrb[51].mxu0 }
 0x4fd   : > { %v1416_v32 = vpop.f32.mrb[52].mxu0 }
 0x4fe   : > { %v1903_v43 = vpop.f32.mrb[53].mxu0 }
 0x505   : > { %v1267_v23 = vpop.f32.mrb[28].mxu1 }
 0x506   : > { %v1853_v47 = vpop.f32.mrb[29].mxu1  ;;  %v1392_v49 = vadd.f32 %v1391_v36, %v1267_v23 }
 0x508   : > { %v1467_v26 = vadd.f32 %v1435_v7, %v1392_v49 }
 0x509   : > { %v1272_v52 = vpop.f32.mrb[30].mxu1 }
 0x50a   : > { %1474 = vst.msk [vmem:[%s2689_s28] sm:$0xff] %vm279_vm0, %v1467_v26  ;;  %v1397_v33 = vadd.f32 %v1396_v19, %v1272_v52  ;;  %v1856_v54 = vpop.f32.mrb[31].mxu1 }
 0x50c   : > { %v1468_v60 = vadd.f32 %v1440_v53, %v1397_v33 }
 0x50d   : > { %v1277_v40 = vpop.f32.mrb[32].mxu1 }
 0x50e   : > { %v1402_v44 = vadd.f32 %v1401_v59, %v1277_v40  ;;  %v1859_v61 = vpop.f32.mrb[33].mxu1  ;;  %1475 = vst.msk [vmem:[%s2689_s28 + $0x8] sm:$0xff] %vm279_vm0, %v1468_v60 }
 0x510   : > { %v1469_v0 = vadd.f32 %v1445_v50, %v1402_v44 }
 0x511   : > { %v1282_v1 = vpop.f32.mrb[34].mxu1 }
 0x512   : > { %1476 = vst.msk [vmem:[%s2689_s28 + $0x10] sm:$0xff] %vm279_vm0, %v1469_v0  ;;  %v1407_v51 = vadd.f32 %v1406_v39, %v1282_v1  ;;  %v1862_v55 = vpop.f32.mrb[35].mxu1 }
 0x514   : > { %v1470_v2 = vadd.f32 %v1450_v63, %v1407_v51 }
 0x515   : > { %v1287_v4 = vpop.f32.mrb[36].mxu1 }
 0x516   : > { %1477 = vst.msk [vmem:[%s2689_s28 + $0x18] sm:$0xff] %vm279_vm0, %v1470_v2  ;;  %v1412_v5 = vadd.f32 %v1411_v41, %v1287_v4  ;;  %v1865_v6 = vpop.f32.mrb[37].mxu1 }
 0x518   : > { %v1471_v8 = vadd.f32 %v1455_v3, %v1412_v5 }
 0x519   : > { %v1292_v9 = vpop.f32.mrb[38].mxu1 }
 0x51a   : > { %1478 = vst.msk [vmem:[%s2689_s28 + $0x20] sm:$0xff] %vm279_vm0, %v1471_v8  ;;  %v1417_v10 = vadd.f32 %v1416_v32, %v1292_v9  ;;  %v1868_v11 = vpop.f32.mrb[39].mxu1 }
 0x51c   : > { %v1472_v13 = vadd.f32 %v1460_v12, %v1417_v10 }
 0x51d   : > { %v1297_v62 = vpop.f32.mrb[40].mxu1 }
 0x51e   : > { %1479 = vst.msk [vmem:[%s2689_s28 + $0x28] sm:$0xff] %vm279_vm0, %v1472_v13  ;;  %v1871_v14 = vpop.f32.mrb[41].mxu1 }
 0x521   : > { %v1421_v15 = vpop.f32.mrb[42].mxu1 }
 0x522   : > { %v1422_v16 = vadd.f32 %v1421_v15, %v1297_v62  ;;  %v1906_v35 = vpop.f32.mrb[43].mxu1 }
 0x524   : > { %v1473_v46 = vadd.f32 %v1465_v37, %v1422_v16 }
 0x526   : > { %1481 = vst.msk [vmem:[%s2689_s28 + $0x30] sm:$0x3] %vm1480_vm6, %v1473_v46 }
 0x527 PF: > { %s16_s21 = sadd.s32 1, %s2108_s21  }
 0x528   : > { %p13_p4 = scmp.ge.s32.totalorder %s16_s21, 4  }
 0x52a   :  { %15 = sbr.rel (!%p13_p4) target bundleno = 1 (0x1), region = 74 }

</bundles_post_ra>
